<compile_context>
chip_gen: v7x
topology: tpu7x:2x2x1
jax: 0.10.0
libtpu: 0.0.40
codegen_flags: <defaults>
</compile_context>

<pallas_src>
import jax
import jax.numpy as jnp
from jax.experimental import pallas as pl
from jax.experimental.pallas import tpu as pltpu

LANE = 128                       # minimum lane width (vreg lane count)
SUBLANE = 8                      # f32 sublane tile
DEFAULT_BLOCK_BYTES = 2 << 20    # 2 MiB block; x+out double-buffered = 8 MiB (< v5e's 16 MiB default)
MIN_SPLIT_BYTES = 256 << 10      # only force a >=2-step grid if each block stays >=256 KiB
MIN_PALLAS_ELEMS = 16 * 1024     # below this, pallas_call/DMA overhead dominates -> let XLA fuse
_LANE_CHOICES = (1024, 512, 256, 128)   # widest lane-dense slab width that fits the input


def linreg_kernel(intercept_ref, slope_ref, x_ref, o_ref):
    # SMEM scalars hoisted into locals once per invocation (no re-broadcast per op).
    b = intercept_ref[0]
    w = slope_ref[0]
    o_ref[...] = b + w * x_ref[...]


def _round_up(x: int, m: int) -> int:
    return (x + m - 1) // m * m


def _choose_lanes(n: int) -> int:
    for cand in _LANE_CHOICES:
        if n >= cand:
            return cand
    return LANE


def _choose_block_rows(rows: int, lanes: int, block_bytes: int) -> int:
    """Big blocks to amortize the ~0.35 us/grid-step cost, but keep the grid
    >=2 steps when splitting still leaves decent blocks (both v7x TCs)."""
    if rows <= SUBLANE:
        return rows                       # full-extent block (allowed by the (8,128) rule)
    row_bytes = lanes * 4
    cap = max(SUBLANE, (block_bytes // row_bytes) // SUBLANE * SUBLANE)
    block_rows = min(cap, _round_up(rows, SUBLANE))
    min_split_rows = max(SUBLANE, _round_up(pl.cdiv(MIN_SPLIT_BYTES, row_bytes), SUBLANE))
    if block_rows >= rows and rows >= 2 * min_split_rows:
        block_rows = _round_up(pl.cdiv(rows, 2), SUBLANE)
    return block_rows


def _linreg_pallas_slab(x_slab, intercept, slope, block_rows):
    rows, lanes = x_slab.shape
    grid = (pl.cdiv(rows, block_rows),)       # ragged final block handled by Pallas
    n_elems = rows * lanes
    return pl.pallas_call(
        linreg_kernel,
        out_shape=jax.ShapeDtypeStruct(x_slab.shape, x_slab.dtype),
        grid=grid,
        in_specs=[
            pl.BlockSpec(memory_space=pltpu.SMEM),                  # intercept (1,)
            pl.BlockSpec(memory_space=pltpu.SMEM),                  # slope     (1,)
            pl.BlockSpec((block_rows, lanes), lambda i: (i, 0)),    # X tile
        ],
        out_specs=pl.BlockSpec((block_rows, lanes), lambda i: (i, 0)),
        compiler_params=pltpu.CompilerParams(
            dimension_semantics=("parallel",),
        ),
        cost_estimate=pl.CostEstimate(
            flops=2 * n_elems, transcendentals=0, bytes_accessed=2 * n_elems * 4),
    )(intercept, slope, x_slab)


def linear_regression(x, intercept, slope, *,
                      block_bytes: int = DEFAULT_BLOCK_BYTES,
                      force_pallas: bool = False):
    """intercept + slope * x, matching LinearRegression.forward.

    x: any shape (the spec uses (N, 1)), float32.
    intercept, slope: (1,) float32 parameters.
    """
    x = jnp.asarray(x, jnp.float32)
    intercept = jnp.asarray(intercept, jnp.float32).reshape((1,))
    slope = jnp.asarray(slope, jnp.float32).reshape((1,))

    n = x.size
    if n == 0 or (n < MIN_PALLAS_ELEMS and not force_pallas):
        # Tiny problem: a single fused XLA elementwise op beats any kernel launch.
        return intercept[0] + slope[0] * x

    x_flat = x.reshape(-1)

    # Lane-dense slab: widest last dim (multiple of 128) that fits the input.
    lanes = _choose_lanes(n)
    n_main = (n // lanes) * lanes     # lane-aligned prefix handled by the kernel
    tail = n - n_main

    tiny_pad = 0
    if n_main == 0:
        # Only reachable with force_pallas and n < 128: pad the tiny input to one row.
        tiny_pad = LANE - n
        x_flat = jnp.pad(x_flat, (0, tiny_pad))
        lanes, n_main, tail = LANE, LANE, 0

    # Aligned prefix: zero-copy reshape when the whole input is lane-aligned;
    # no padding to a multiple of block size (Pallas handles the ragged block).
    x_main = x_flat if tail == 0 else x_flat[:n_main]
    rows = n_main // lanes
    x_slab = x_main.reshape(rows, lanes)
    block_rows = _choose_block_rows(rows, lanes, block_bytes)

    y_main = _linreg_pallas_slab(x_slab, intercept, slope, block_rows).reshape(-1)

    if tail:
        # Sub-lane-width remainder: fused XLA elementwise; no extra pass over the slab.
        y_tail = intercept[0] + slope[0] * x_flat[n_main:]
        y_flat = jnp.concatenate([y_main, y_tail])
    else:
        y_flat = y_main

    if tiny_pad:
        y_flat = y_flat[:n]
    return y_flat.reshape(x.shape)


if __name__ == "__main__":
    # Same data construction as the PyTorch script: arange(100, 537, 2.7) -> (162, 1) f32.
    X = jnp.arange(100.0, 537.0, 2.7, dtype=jnp.float32)[:, None]

    # Deterministic parameter init (stand-in for torch.randn).
    key = jax.random.PRNGKey(0)
    k_i, k_s = jax.random.split(key)
    intercept = jax.random.normal(k_i, (1,), dtype=jnp.float32)
    slope = jax.random.normal(k_s, (1,), dtype=jnp.float32)

    def ref(xx):
        return intercept + slope * xx

    # 1) Spec-sized input, forced through the Pallas path (128-aligned prefix + XLA tail).
    y = jax.block_until_ready(linear_regression(X, intercept, slope, force_pallas=True))
    assert y.shape == X.shape and y.dtype == jnp.float32
    assert jnp.allclose(y, ref(X), rtol=1e-6, atol=1e-6)

    # 2) Lane-aligned input large enough for the natural Pallas path:
    #    zero-copy reshape, >=2-block grid (both TCs on v7x), no tail.
    X2 = jax.random.normal(jax.random.PRNGKey(1), (512, 1024), dtype=jnp.float32)
    y2 = jax.block_until_ready(linear_regression(X2, intercept, slope))
    assert y2.shape == X2.shape
    assert jnp.allclose(y2, ref(X2), rtol=1e-6, atol=1e-6)

    # 3) Unaligned input: aligned prefix through the kernel, <lanes tail through XLA.
    X3 = jax.random.normal(jax.random.PRNGKey(2), (300, 137), dtype=jnp.float32)
    y3 = jax.block_until_ready(linear_regression(X3, intercept, slope))
    assert y3.shape == X3.shape
    assert jnp.allclose(y3, ref(X3), rtol=1e-6, atol=1e-6)

    print("KERNEL_OK")
</pallas_src>

<mosaic_0001>
module attributes {stable_mosaic.version = 11 : i64} {
  func.func @linreg_kernel(%arg0: i32, %arg1: memref<1xf32, #tpu.memory_space<smem>>, %arg2: memref<1xf32, #tpu.memory_space<smem>>, %arg3: memref<1x128xf32, #tpu.memory_space<vmem>>, %arg4: memref<1x128xf32, #tpu.memory_space<vmem>>) attributes {dimension_semantics = [#tpu.dimension_semantics<parallel>], iteration_bounds = array<i64: 1>, scalar_prefetch = 0 : i64, scratch_operands = 0 : i64, tpu.core_type = #tpu.core_type<tc>, window_params = [{transform_indices = @transform_0, window_bounds = array<i64: 1>}, {transform_indices = @transform_1, window_bounds = array<i64: 1>}, {transform_indices = @transform_2, window_bounds = array<i64: 1, 128>}, {transform_indices = @transform_3, window_bounds = array<i64: 1, 128>}]} {
    %c0 = arith.constant 0 : index
    %0 = memref.load %arg1[%c0] : memref<1xf32, #tpu.memory_space<smem>>
    %c0_0 = arith.constant 0 : index
    %1 = memref.load %arg2[%c0_0] : memref<1xf32, #tpu.memory_space<smem>>
    %c0_1 = arith.constant 0 : index
    %c0_2 = arith.constant 0 : index
    %2 = vector.load %arg3[%c0_1, %c0_2] : memref<1x128xf32, #tpu.memory_space<vmem>>, vector<1x128xf32>
    %3 = vector.broadcast %1 : f32 to vector<1x128xf32>
    %4 = arith.mulf %3, %2 : vector<1x128xf32>
    %5 = vector.broadcast %0 : f32 to vector<1x128xf32>
    %6 = arith.addf %5, %4 : vector<1x128xf32>
    %c0_3 = arith.constant 0 : index
    %c0_4 = arith.constant 0 : index
    %7 = vector.load %arg4[%c0_3, %c0_4] : memref<1x128xf32, #tpu.memory_space<vmem>>, vector<1x128xf32>
    tpu.vector_store %arg4[%c0_3, %c0_4], %6 {strides = array<i32>} : memref<1x128xf32, #tpu.memory_space<vmem>>, vector<1x128xf32>,
    return
  }
  func.func @transform_0(%arg0: i32) -> i32 {
    %c0_i32 = arith.constant 0 : i32
    %c0_i32_0 = arith.constant 0 : i32
    return %c0_i32 : i32
  }
  func.func @transform_1(%arg0: i32) -> i32 {
    %c0_i32 = arith.constant 0 : i32
    %c0_i32_0 = arith.constant 0 : i32
    return %c0_i32 : i32
  }
  func.func @transform_2(%arg0: i32) -> (i32, i32) {
    %c0_i32 = arith.constant 0 : i32
    %c0_i32_0 = arith.constant 0 : i32
    return %arg0, %c0_i32 : i32, i32
  }
  func.func @transform_3(%arg0: i32) -> (i32, i32) {
    %c0_i32 = arith.constant 0 : i32
    %c0_i32_0 = arith.constant 0 : i32
    return %arg0, %c0_i32 : i32, i32
  }
}

</mosaic_0001>

<bundles_post_ra>
// kernel: tpu_custom_call.1
= control target key start
LH: loop header
LB: loop body
LE: loop exit
PB: predicated region body
PF: predicated region fallthrough
CT: control target
= control target key end

     0   :  { %s106_s0 = inlined_call_operand.<no memory space> [shape: f32[1], index: 0, kind: input, shape index: {}]   ;;  %s107_s1 = inlined_call_operand.<no memory space> [shape: f32[1], index: 1, kind: input, shape index: {}]   ;;  %s108_s2 = inlined_call_operand.vmem [shape: f32[1,128], index: 2, kind: input, shape index: {}]   ;;  %s109_s3 = inlined_call_operand.hbm [shape: f32[1,128], index: 3, kind: output, shape index: {}]  }
   0x1   :  { %v19_v0 = vld [vmem:[%s108_s2] sm:$0x1]  ;;  %v20_v1 = vstv %s107_s1  ;;  %v22_v2 = vstv %s106_s0 }
   0x2   :  { %10 = vsyncpa [#allocation5], 0  ;;  %v21_v3 = vmul.f32 %v20_v1, %v19_v0  ;;  %s64_s18 = smov [#allocation4]  }
   0x3   :  { %s31_s19 = sshll.u32 %s64_s18, 4  ;;  %s32_s19 = int_to_ptr.vmem [resolvable:$true] %s31_s19 }
   0x4   :  { %v23_v4 = vadd.f32 %v22_v2, %v21_v3  ;;  %s40_s20 = scalar_lea.vmem %s32_s19, 16  ;;  %s44_s21 = scalar_lea.vmem %s32_s19, 32 }
   0x5   :  { %p41_p0 = scmp.ne.s32.totalorder %s32_s19, %s40_s20  ;;  %p45_p1 = scmp.lt.s32.totalorder %s32_s19, %s32_s19 }
   0x6   :  { %24 = vst [vmem:[#allocation4] sm:$0x1] %v23_v4  ;;  %p46_p2 = scmp.lt.s32.totalorder %s44_s21, %s40_s20 }
   0x8   :  { %p47_p3 = por %p46_p2, %p45_p1 }
   0xa   :  { %p48_p4 = pnand %p47_p3, %p41_p0 }
   0xc   :  { %51 = shalt.err (!%p48_p4)
}
   0xd   :  { %s52_s22 = scalar_lea.hbm %s109_s3, 16 }
   0xe   :  { %p53_p5 = scmp.ne.s32.totalorder %s109_s3, %s52_s22  ;;  %p56_p6 = scmp.lt.u32.totalorder %s52_s22, %s109_s3 }
  0x10   :  { %p58_p7 = pnand %p56_p6, %p53_p5 }
  0x12   :  { %61 = shalt.err (!%p58_p7)
}
  0x13   :  { %34 = dma.vmem_to_hbm [thread:$0]  %s32_s19, 16, %s109_s3, [#allocation5]  }
  0x14   :  { %62 = dma.done.wait [#allocation5], 16  }
  0x15   :  { %63 = vsyncadd [#allocation5], 4294967280 }
  0x16   :  { %38 = vsyncpa [#allocation5], 1 }

</bundles_post_ra>
